<compile_context>
chip_gen: v6e
topology: v6e:2x2x1
jax: 0.10.0
libtpu: 0.0.40
codegen_flags: <defaults>
</compile_context>

<pallas_src>
import jax
import jax.numpy as jnp
from jax.experimental import pallas as pl
from jax.experimental.pallas import tpu as pltpu

# ----------------------------- model dims ---------------------------------
BATCH = 8
IMG = 16
N_PIXELS = IMG * IMG          # 256
N_HIDDEN = 128
N_LATENT = 32

# packed-bias layout: every segment starts at a 128-lane boundary
_B1E_OFF = 0            # width 128  (encoder hidden bias)
_BMULV_OFF = 128        # width 64   (mu | logvar bias), 64 lanes of padding follow
_B1D_OFF = 256          # width 128  (decoder hidden bias)
_B2D_OFF = 384          # width 256  (decoder output bias)
_BIAS_TOTAL = 640


def _round_up(n: int, m: int) -> int:
    return ((n + m - 1) // m) * m


# ------------------------------ kernel ------------------------------------
def bernoulli_vae_kernel(x_ref, u_ref, eps_ref,        # (TB,256), (TB,256), (TB,32) f32
                         w1e_ref,                      # (256,128) bf16
                         wmulv_ref,                    # (128, 64) bf16  (Wmu | Wlv)
                         w1d_ref,                      # ( 32,128) bf16
                         w2d_ref,                      # (128,256) bf16
                         bias_ref,                     # (  1,640) f32 packed biases
                         out_ref):                     # (TB,256)  f32
    # ---- x_binary = torch.bernoulli(x): u ~ U[0,1) drawn on host -----------
    x_bin = jnp.where(u_ref[...] < x_ref[...], 1.0, 0.0).astype(jnp.bfloat16)

    b1e = bias_ref[:, _B1E_OFF:_B1E_OFF + N_HIDDEN]
    bmulv = bias_ref[:, _BMULV_OFF:_BMULV_OFF + 2 * N_LATENT]
    b1d = bias_ref[:, _B1D_OFF:_B1D_OFF + N_HIDDEN]
    b2d = bias_ref[:, _B2D_OFF:_B2D_OFF + N_PIXELS]

    # ---- GaussianEncoder ----------------------------------------------------
    h = jnp.dot(x_bin, w1e_ref[...], preferred_element_type=jnp.float32)
    h = jnp.maximum(h + b1e, 0.0)

    # fused mu / logvar head: one (TB,128) @ (128,64) matmul
    head = jnp.dot(h.astype(jnp.bfloat16), wmulv_ref[...],
                   preferred_element_type=jnp.float32) + bmulv
    mu = head[:, :N_LATENT]
    logvar = head[:, N_LATENT:]

    # reparameterization: z = mu + sigma * eps     (f32)
    z = mu + jnp.exp(0.5 * logvar) * eps_ref[...]

    # ---- BernoulliDecoder ---------------------------------------------------
    hd = jnp.dot(z.astype(jnp.bfloat16), w1d_ref[...],
                 preferred_element_type=jnp.float32)
    hd = jnp.maximum(hd + b1d, 0.0)
    logits = jnp.dot(hd.astype(jnp.bfloat16), w2d_ref[...],
                     preferred_element_type=jnp.float32) + b2d
    out_ref[...] = jax.nn.sigmoid(logits)             # f32 sigmoid


# ------------------------------ wrapper ------------------------------------
def pack_params(params):
    """(w1e,b1e,wmu,bmu,wlv,blv,w1d,b1d,w2d,b2d) -> 5 packed kernel operands."""
    w1e, b1e, wmu, bmu, wlv, blv, w1d, b1d, w2d, b2d = params
    wmulv = jnp.concatenate([wmu, wlv], axis=1)                          # (128, 64)
    pad = jnp.zeros((1, 64), jnp.float32)
    bias = jnp.concatenate([b1e, bmu, blv, pad, b1d, b2d], axis=1)       # (1, 640)
    return (w1e.astype(jnp.bfloat16), wmulv.astype(jnp.bfloat16),
            w1d.astype(jnp.bfloat16), w2d.astype(jnp.bfloat16),
            bias.astype(jnp.float32))


def bernoulli_vae_forward(x_nchw, packed_params, eps, u, *, batch_tile=128):
    w1e, wmulv, w1d, w2d, bias = packed_params
    b = x_nchw.shape[0]
    x_flat = x_nchw.reshape(b, -1).astype(jnp.float32)    # == torch x.flatten(1)
    u = u.astype(jnp.float32)
    eps = eps.astype(jnp.float32)

    # batch tile: 128 rows for large batches (fills MXU rows), else the smallest
    # sublane-aligned tile covering the batch.
    tb = batch_tile if b >= batch_tile else _round_up(b, 8)
    b_pad = _round_up(b, tb)
    if b_pad != b:
        x_flat = jnp.pad(x_flat, ((0, b_pad - b), (0, 0)))
        u = jnp.pad(u, ((0, b_pad - b), (0, 0)), constant_values=1.0)   # pad -> x_bin=0
        eps = jnp.pad(eps, ((0, b_pad - b), (0, 0)))

    out = pl.pallas_call(
        bernoulli_vae_kernel,
        out_shape=jax.ShapeDtypeStruct((b_pad, N_PIXELS), jnp.float32),
        grid=(pl.cdiv(b_pad, tb),),
        in_specs=[
            pl.BlockSpec((tb, N_PIXELS), lambda i: (i, 0)),             # x probs
            pl.BlockSpec((tb, N_PIXELS), lambda i: (i, 0)),             # uniforms
            pl.BlockSpec((tb, N_LATENT), lambda i: (i, 0)),             # eps
            pl.BlockSpec((N_PIXELS, N_HIDDEN), lambda i: (0, 0)),       # W1e (resident)
            pl.BlockSpec((N_HIDDEN, 2 * N_LATENT), lambda i: (0, 0)),   # Wmu|Wlv
            pl.BlockSpec((N_LATENT, N_HIDDEN), lambda i: (0, 0)),       # W1d
            pl.BlockSpec((N_HIDDEN, N_PIXELS), lambda i: (0, 0)),       # W2d
            pl.BlockSpec((1, _BIAS_TOTAL), lambda i: (0, 0)),           # packed biases
        ],
        out_specs=pl.BlockSpec((tb, N_PIXELS), lambda i: (i, 0)),
        compiler_params=pltpu.CompilerParams(
            dimension_semantics=("parallel",)),
    )(x_flat, u, eps, w1e, wmulv, w1d, w2d, bias)
    return out[:b]


# ------------------------- deterministic params -----------------------------
def init_params(key):
    ks = jax.random.split(key, 6)
    scale = 0.05
    w1e = scale * jax.random.normal(ks[0], (N_PIXELS, N_HIDDEN), jnp.float32)
    b1e = jnp.zeros((1, N_HIDDEN), jnp.float32)
    wmu = scale * jax.random.normal(ks[1], (N_HIDDEN, N_LATENT), jnp.float32)
    bmu = jnp.zeros((1, N_LATENT), jnp.float32)
    wlv = scale * jax.random.normal(ks[2], (N_HIDDEN, N_LATENT), jnp.float32)
    blv = jnp.zeros((1, N_LATENT), jnp.float32)
    w1d = scale * jax.random.normal(ks[3], (N_LATENT, N_HIDDEN), jnp.float32)
    b1d = jnp.zeros((1, N_HIDDEN), jnp.float32)
    w2d = scale * jax.random.normal(ks[4], (N_HIDDEN, N_PIXELS), jnp.float32)
    b2d = jnp.zeros((1, N_PIXELS), jnp.float32)
    return (w1e, b1e, wmu, bmu, wlv, blv, w1d, b1d, w2d, b2d)


if __name__ == "__main__":
    key = jax.random.PRNGKey(0)
    k_x, k_eps, k_u, k_p = jax.random.split(key, 4)

    # x holds Bernoulli probabilities in [0, 1], NCHW images
    x = jax.random.uniform(k_x, (BATCH, 1, IMG, IMG), jnp.float32)
    # reparameterization noise (torch.randn) and Bernoulli uniforms (torch.bernoulli)
    eps = jax.random.normal(k_eps, (BATCH, N_LATENT), jnp.float32)
    u = jax.random.uniform(k_u, (BATCH, N_PIXELS), jnp.float32)
    params = init_params(k_p)
    packed = pack_params(params)

    pmf = bernoulli_vae_forward(x, packed, eps, u)
    pmf = jax.block_until_ready(pmf)

    assert pmf.shape == (BATCH, N_PIXELS)
    assert bool(jnp.all((pmf > 0.0) & (pmf < 1.0)))
    assert bool(jnp.all(jnp.isfinite(pmf)))
    print("KERNEL_OK")
</pallas_src>

<mosaic_0001>
module attributes {stable_mosaic.version = 11 : i64} {
  func.func @bernoulli_vae_kernel(%arg0: i32, %arg1: memref<8x256xf32, #tpu.memory_space<vmem>>, %arg2: memref<8x256xf32, #tpu.memory_space<vmem>>, %arg3: memref<8x32xf32, #tpu.memory_space<vmem>>, %arg4: memref<256x128xbf16, #tpu.memory_space<vmem>>, %arg5: memref<128x64xbf16, #tpu.memory_space<vmem>>, %arg6: memref<32x128xbf16, #tpu.memory_space<vmem>>, %arg7: memref<128x256xbf16, #tpu.memory_space<vmem>>, %arg8: memref<1x640xf32, #tpu.memory_space<vmem>>, %arg9: memref<8x256xf32, #tpu.memory_space<vmem>>) attributes {dimension_semantics = [#tpu.dimension_semantics<parallel>], iteration_bounds = array<i64: 1>, scalar_prefetch = 0 : i64, scratch_operands = 0 : i64, tpu.core_type = #tpu.core_type<tc>, window_params = [{transform_indices = @transform_0, window_bounds = array<i64: 8, 256>}, {transform_indices = @transform_1, window_bounds = array<i64: 8, 256>}, {transform_indices = @transform_2, window_bounds = array<i64: 8, 32>}, {pipeline_mode = #tpu.pipeline_mode<synchronous>, transform_indices = @transform_3, window_bounds = array<i64: 256, 128>}, {pipeline_mode = #tpu.pipeline_mode<synchronous>, transform_indices = @transform_4, window_bounds = array<i64: 128, 64>}, {pipeline_mode = #tpu.pipeline_mode<synchronous>, transform_indices = @transform_5, window_bounds = array<i64: 32, 128>}, {pipeline_mode = #tpu.pipeline_mode<synchronous>, transform_indices = @transform_6, window_bounds = array<i64: 128, 256>}, {pipeline_mode = #tpu.pipeline_mode<synchronous>, transform_indices = @transform_7, window_bounds = array<i64: 1, 640>}, {transform_indices = @transform_8, window_bounds = array<i64: 8, 256>}]} {
    %c0 = arith.constant 0 : index
    %c0_0 = arith.constant 0 : index
    %0 = vector.load %arg2[%c0, %c0_0] : memref<8x256xf32, #tpu.memory_space<vmem>>, vector<8x256xf32>
    %c0_1 = arith.constant 0 : index
    %c0_2 = arith.constant 0 : index
    %1 = vector.load %arg1[%c0_1, %c0_2] : memref<8x256xf32, #tpu.memory_space<vmem>>, vector<8x256xf32>
    %2 = arith.cmpf olt, %0, %1 : vector<8x256xf32>
    %cst = arith.constant 1.000000e+00 : f32
    %cst_3 = arith.constant 0.000000e+00 : f32
    %3 = vector.broadcast %cst : f32 to vector<8x256xf32>
    %4 = vector.broadcast %cst_3 : f32 to vector<8x256xf32>
    %5 = arith.select %2, %3, %4 : vector<8x256xi1>, vector<8x256xf32>
    %6 = arith.truncf %5 : vector<8x256xf32> to vector<8x256xbf16>
    %c0_4 = arith.constant 0 : index
    %c0_5 = arith.constant 0 : index
    %7 = vector.load %arg8[%c0_4, %c0_5] : memref<1x640xf32, #tpu.memory_space<vmem>>, vector<1x128xf32>
    %c0_6 = arith.constant 0 : index
    %c128 = arith.constant 128 : index
    %8 = vector.load %arg8[%c0_6, %c128] : memref<1x640xf32, #tpu.memory_space<vmem>>, vector<1x64xf32>
    %c0_7 = arith.constant 0 : index
    %c256 = arith.constant 256 : index
    %9 = vector.load %arg8[%c0_7, %c256] : memref<1x640xf32, #tpu.memory_space<vmem>>, vector<1x128xf32>
    %c0_8 = arith.constant 0 : index
    %c384 = arith.constant 384 : index
    %10 = vector.load %arg8[%c0_8, %c384] : memref<1x640xf32, #tpu.memory_space<vmem>>, vector<1x256xf32>
    %c0_9 = arith.constant 0 : index
    %c0_10 = arith.constant 0 : index
    %11 = vector.load %arg4[%c0_9, %c0_10] : memref<256x128xbf16, #tpu.memory_space<vmem>>, vector<256x128xbf16>
    %cst_11 = arith.constant dense<0.000000e+00> : vector<8x128xf32>
    %12 = tpu.matmul %6, %11, %cst_11 {dimension_numbers = #tpu.dot_dimension_numbers<[1], [0], [0], [1], [0, 0, 1, 1], [], []>} : vector<8x256xbf16>, vector<256x128xbf16>, vector<8x128xf32> -> vector<8x128xf32>
    %13 = vector.broadcast %7 : vector<1x128xf32> to vector<8x128xf32>
    %14 = arith.addf %12, %13 : vector<8x128xf32>
    %cst_12 = arith.constant 0.000000e+00 : f32
    %15 = vector.broadcast %cst_12 : f32 to vector<8x128xf32>
    %16 = arith.maximumf %14, %15 : vector<8x128xf32>
    %17 = arith.truncf %16 : vector<8x128xf32> to vector<8x128xbf16>
    %c0_13 = arith.constant 0 : index
    %c0_14 = arith.constant 0 : index
    %18 = vector.load %arg5[%c0_13, %c0_14] : memref<128x64xbf16, #tpu.memory_space<vmem>>, vector<128x64xbf16>
    %cst_15 = arith.constant dense<0.000000e+00> : vector<8x64xf32>
    %19 = tpu.matmul %17, %18, %cst_15 {dimension_numbers = #tpu.dot_dimension_numbers<[1], [0], [0], [1], [0, 0, 1, 1], [], []>} : vector<8x128xbf16>, vector<128x64xbf16>, vector<8x64xf32> -> vector<8x64xf32>
    %20 = vector.broadcast %8 : vector<1x64xf32> to vector<8x64xf32>
    %21 = arith.addf %19, %20 : vector<8x64xf32>
    %22 = vector.extract_strided_slice %21 {offsets = [0, 0], sizes = [8, 32], strides = [1, 1]} : vector<8x64xf32> to vector<8x32xf32>
    %23 = vector.extract_strided_slice %21 {offsets = [0, 32], sizes = [8, 32], strides = [1, 1]} : vector<8x64xf32> to vector<8x32xf32>
    %cst_16 = arith.constant 5.000000e-01 : f32
    %24 = vector.broadcast %cst_16 : f32 to vector<8x32xf32>
    %25 = arith.mulf %24, %23 : vector<8x32xf32>
    %26 = math.exp %25 : vector<8x32xf32>
    %c0_17 = arith.constant 0 : index
    %c0_18 = arith.constant 0 : index
    %27 = vector.load %arg3[%c0_17, %c0_18] : memref<8x32xf32, #tpu.memory_space<vmem>>, vector<8x32xf32>
    %28 = arith.mulf %26, %27 : vector<8x32xf32>
    %29 = arith.addf %22, %28 : vector<8x32xf32>
    %30 = arith.truncf %29 : vector<8x32xf32> to vector<8x32xbf16>
    %c0_19 = arith.constant 0 : index
    %c0_20 = arith.constant 0 : index
    %31 = vector.load %arg6[%c0_19, %c0_20] : memref<32x128xbf16, #tpu.memory_space<vmem>>, vector<32x128xbf16>
    %cst_21 = arith.constant dense<0.000000e+00> : vector<8x128xf32>
    %32 = tpu.matmul %30, %31, %cst_21 {dimension_numbers = #tpu.dot_dimension_numbers<[1], [0], [0], [1], [0, 0, 1, 1], [], []>} : vector<8x32xbf16>, vector<32x128xbf16>, vector<8x128xf32> -> vector<8x128xf32>
    %33 = vector.broadcast %9 : vector<1x128xf32> to vector<8x128xf32>
    %34 = arith.addf %32, %33 : vector<8x128xf32>
    %cst_22 = arith.constant 0.000000e+00 : f32
    %35 = vector.broadcast %cst_22 : f32 to vector<8x128xf32>
    %36 = arith.maximumf %34, %35 : vector<8x128xf32>
    %37 = arith.truncf %36 : vector<8x128xf32> to vector<8x128xbf16>
    %c0_23 = arith.constant 0 : index
    %c0_24 = arith.constant 0 : index
    %38 = vector.load %arg7[%c0_23, %c0_24] : memref<128x256xbf16, #tpu.memory_space<vmem>>, vector<128x256xbf16>
    %cst_25 = arith.constant dense<0.000000e+00> : vector<8x256xf32>
    %39 = tpu.matmul %37, %38, %cst_25 {dimension_numbers = #tpu.dot_dimension_numbers<[1], [0], [0], [1], [0, 0, 1, 1], [], []>} : vector<8x128xbf16>, vector<128x256xbf16>, vector<8x256xf32> -> vector<8x256xf32>
    %40 = vector.broadcast %10 : vector<1x256xf32> to vector<8x256xf32>
    %41 = arith.addf %39, %40 : vector<8x256xf32>
    %42 = arith.negf %41 : vector<8x256xf32>
    %43 = math.exp %42 : vector<8x256xf32>
    %cst_26 = arith.constant 1.000000e+00 : f32
    %44 = vector.broadcast %cst_26 : f32 to vector<8x256xf32>
    %45 = arith.addf %44, %43 : vector<8x256xf32>
    %46 = arith.divf %44, %45 : vector<8x256xf32>
    %c0_27 = arith.constant 0 : index
    %c0_28 = arith.constant 0 : index
    %47 = vector.load %arg9[%c0_27, %c0_28] : memref<8x256xf32, #tpu.memory_space<vmem>>, vector<8x256xf32>
    tpu.vector_store %arg9[%c0_27, %c0_28], %46 {strides = array<i32>} : memref<8x256xf32, #tpu.memory_space<vmem>>, vector<8x256xf32>,
    return
  }
  func.func @transform_0(%arg0: i32) -> (i32, i32) {
    %c0_i32 = arith.constant 0 : i32
    %c0_i32_0 = arith.constant 0 : i32
    return %arg0, %c0_i32 : i32, i32
  }
  func.func @transform_1(%arg0: i32) -> (i32, i32) {
    %c0_i32 = arith.constant 0 : i32
    %c0_i32_0 = arith.constant 0 : i32
    return %arg0, %c0_i32 : i32, i32
  }
  func.func @transform_2(%arg0: i32) -> (i32, i32) {
    %c0_i32 = arith.constant 0 : i32
    %c0_i32_0 = arith.constant 0 : i32
    return %arg0, %c0_i32 : i32, i32
  }
  func.func @transform_3(%arg0: i32) -> (i32, i32) {
    %c0_i32 = arith.constant 0 : i32
    %c0_i32_0 = arith.constant 0 : i32
    %c0_i32_1 = arith.constant 0 : i32
    return %c0_i32, %c0_i32_0 : i32, i32
  }
  func.func @transform_4(%arg0: i32) -> (i32, i32) {
    %c0_i32 = arith.constant 0 : i32
    %c0_i32_0 = arith.constant 0 : i32
    %c0_i32_1 = arith.constant 0 : i32
    return %c0_i32, %c0_i32_0 : i32, i32
  }
  func.func @transform_5(%arg0: i32) -> (i32, i32) {
    %c0_i32 = arith.constant 0 : i32
    %c0_i32_0 = arith.constant 0 : i32
    %c0_i32_1 = arith.constant 0 : i32
    return %c0_i32, %c0_i32_0 : i32, i32
  }
  func.func @transform_6(%arg0: i32) -> (i32, i32) {
    %c0_i32 = arith.constant 0 : i32
    %c0_i32_0 = arith.constant 0 : i32
    %c0_i32_1 = arith.constant 0 : i32
    return %c0_i32, %c0_i32_0 : i32, i32
  }
  func.func @transform_7(%arg0: i32) -> (i32, i32) {
    %c0_i32 = arith.constant 0 : i32
    %c0_i32_0 = arith.constant 0 : i32
    %c0_i32_1 = arith.constant 0 : i32
    return %c0_i32, %c0_i32_0 : i32, i32
  }
  func.func @transform_8(%arg0: i32) -> (i32, i32) {
    %c0_i32 = arith.constant 0 : i32
    %c0_i32_0 = arith.constant 0 : i32
    return %arg0, %c0_i32 : i32, i32
  }
}

</mosaic_0001>

<bundles_post_ra>
// kernel: tpu_custom_call.1
= control target key start
LH: loop header
LB: loop body
LE: loop exit
PB: predicated region body
PF: predicated region fallthrough
CT: control target
= control target key end

     0   :  { %13 = vsyncpa [#allocation3], 0  ;;  %s1009_s0 = inlined_call_operand.vmem [shape: f32[8,256], index: 0, kind: input, shape index: {}]   ;;  %s1010_s1 = inlined_call_operand.vmem [shape: f32[8,256], index: 1, kind: input, shape index: {}]   ;;  %s1011_s2 = inlined_call_operand.vmem [shape: f32[8,32], index: 2, kind: input, shape index: {}]   ;;  %s1012_s3 = inlined_call_operand.hbm [shape: bf16[256,128], index: 3, kind: input, shape index: {}]   ;;  %s1013_s4 = inlined_call_operand.vmem [shape: bf16[128,64], index: 4, kind: input, shape index: {}]   ;;  %s1014_s5 = inlined_call_operand.vmem [shape: bf16[32,128], index: 5, kind: input, shape index: {}]   ;;  %s1015_s6 = inlined_call_operand.hbm [shape: bf16[128,256], index: 6, kind: input, shape index: {}]   ;;  %s1016_s7 = inlined_call_operand.vmem [shape: f32[1,640], index: 7, kind: input, shape index: {}]   ;;  %s1017_s8 = inlined_call_operand.hbm [shape: f32[8,256], index: 8, kind: output, shape index: {}]  }
   0x1   :  { %14 = vsyncpa [#allocation6], 0 }
   0x2   :  { %15 = vsyncpa [#allocation4], 0  ;;  %s873_s27 = smov [#allocation2]  }
   0x3   :  { %s27_s28 = sshll.u32 %s873_s27, 4  ;;  %s28_s28 = int_to_ptr.vmem [resolvable:$true] %s27_s28 }
   0x4   :  { %s815_s29 = scalar_lea.vmem %s28_s28, 2048  ;;  %p820_p1 = scmp.lt.s32.totalorder %s28_s28, %s28_s28 }
   0x5   :  { %p816_p0 = scmp.ne.s32.totalorder %s28_s28, %s815_s29  ;;  %p821_p2 = scmp.lt.s32.totalorder %s815_s29, %s815_s29 }
   0x7   :  { %p822_p3 = por %p821_p2, %p820_p1 }
   0x9   :  { %p823_p4 = pnand %p822_p3, %p816_p0 }
   0xb   :  { %826 = shalt.err (!%p823_p4)
}
   0xc   :  { %s874_s30 = smov 64   ;;  %s875_s9 = smov 4  }
   0xd   :  { %33 = dma.hbm_to_vmem [thread:$0]  %s1012_s3, 2048, %s28_s28, [#allocation3], %s874_s30, %s874_s30, %s875_s9  }
   0xe   :  { %s876_s12 = smov [#allocation5]  }
   0xf   :  { %s43_s13 = sshll.u32 %s876_s12, 4  ;;  %s44_s13 = int_to_ptr.vmem [resolvable:$true] %s43_s13 }
  0x10   :  { %s835_s14 = scalar_lea.vmem %s44_s13, 2048  ;;  %p840_p6 = scmp.lt.s32.totalorder %s44_s13, %s44_s13 }
  0x11   :  { %p836_p5 = scmp.ne.s32.totalorder %s44_s13, %s835_s14  ;;  %p841_p7 = scmp.lt.s32.totalorder %s835_s14, %s835_s14 }
  0x13   :  { %p842_p8 = por %p841_p7, %p840_p6 }
  0x15   :  { %p843_p9 = pnand %p842_p8, %p836_p5 }
  0x17   :  { %846 = shalt.err (!%p843_p9)
}
  0x18   :  { %s877_s15 = smov 128   ;;  %s878_s16 = smov 8  }
  0x19   :  { %49 = dma.hbm_to_vmem [thread:$0]  %s1015_s6, 2048, %s44_s13, [#allocation6], %s877_s15, %s877_s15, %s878_s16  }
  0x1a   :  { %867 = dma.done.wait [#allocation3], 2048  }
  0x1b   :  { %868 = vsyncadd [#allocation3], 4294965248 }
  0x1c   :  { %869 = dma.done.wait [#allocation6], 2048  }
  0x1d   :  { %870 = vsyncadd [#allocation6], 4294965248  ;;  %v879_v0 = vmov 0.0   ;;  %v747_v1 = vld [vmem:[#allocation2 + $0x78] sm:$0xff]   ;;  %v749_v3 = vld [vmem:[#allocation2 + $0x70] sm:$0xff]   ;;  %vm881_vm4 = vmmov 0  }
  0x1e   :  { %706 = vmatprep.subr.bf16.mxu1 %v879_v0  ;;  %v748_v2 = vld [vmem:[#allocation2 + $0x38] sm:$0xff]   ;;  %672 = vmatprep.subr.bf16.mxu0 %v747_v1  ;;  %v750_v4 = vld [vmem:[#allocation2 + $0x30] sm:$0xff]   ;;  %v751_v5 = vld [vmem:[#allocation2 + $0x68] sm:$0xff]   ;;  %v880_v17 = vmov 1.0|1.0   ;;  %s882_s3 = smov 32  }
  0x1f   :  { %673 = vmatpush3.bf16.msra.mxu0 %v748_v2  ;;  %v752_v6 = vld [vmem:[#allocation2 + $0x28] sm:$0xff]   ;;  %v753_v7 = vld [vmem:[#allocation2 + $0x60] sm:$0xff]   ;;  %v755_v9 = vld [vmem:[#allocation2 + $0x58] sm:$0xff]   ;;  %722 = vmatprep.mubr.msk.bf16.mxu1 %vm881_vm4, %v879_v0  ;;  %s883_s24 = smov 96   ;;  %vm396_vm5 = vcmask 261120  }
  0x20   :  { %674 = vmatprep.subr.bf16.mxu0 %v749_v3  ;;  %v754_v8 = vld [vmem:[#allocation2 + $0x20] sm:$0xff]   ;;  %v756_v10 = vld [vmem:[#allocation2 + $0x18] sm:$0xff]   ;;  %v757_v11 = vld [vmem:[#allocation2 + $0x50] sm:$0xff]  }
  0x21   :  { %v60_v12 = vld [vmem:[%s1010_s1 + $0x8] sm:$0xff]  ;;  %v763_v14 = vld [vmem:[%s1013_s4 + $0x38] sm:$0xff]   ;;  %v758_v15 = vld [vmem:[#allocation2 + $0x10] sm:$0xff]  }
  0x22   :  { %v62_v13 = vld [vmem:[%s1009_s0 + $0x8] sm:$0xff]  ;;  %707 = vmatpush3.bf16.msra.mxu1 %v763_v14  ;;  %v764_v18 = vld [vmem:[%s1013_s4 + $0x30] sm:$0xff]   ;;  %v761_v20 = vld [vmem:[#allocation2 + $0x40] sm:$0xff]  }
  0x23   :  { %675 = vmatpush3.bf16.msra.mxu0 %v750_v4  ;;  %vm64_vm0 = vcmp.lt.f32.partialorder %v60_v12, %v62_v13  ;;  %v759_v16 = vld [vmem:[#allocation2 + $0x48] sm:$0xff]   ;;  %708 = vmatprep.subr.bf16.mxu1 %v879_v0  ;;  %v59_v22 = vld [vmem:[%s1010_s1] sm:$0xff]  ;;  %v767_v26 = vld [vmem:[%s1013_s4 + $0x18] sm:$0xff]  }
  0x24   :  { %676 = vmatprep.subr.bf16.mxu0 %v751_v5  ;;  %vm637_vm1 = vmpackc.low %vm64_vm0, %vm64_vm0  ;;  %v760_v19 = vld [vmem:[#allocation2 + $0x8] sm:$0xff]   ;;  %v61_v23 = vld [vmem:[%s1009_s0] sm:$0xff] }
  0x25   :  { %638 = vmatprep.mubr.msk.bf16.mxu0 %vm637_vm1, %v880_v17  ;;  %v765_v21 = vld [vmem:[%s1013_s4 + $0x28] sm:$0xff]   ;;  %v762_v24 = vld [vmem:[#allocation2] sm:$0xff]   ;;  %vm63_vm2 = vcmp.lt.f32.partialorder %v59_v22, %v61_v23  ;;  %v768_v27 = vld [vmem:[%s1013_s4 + $0x10] sm:$0xff]  }
  0x26   :  { %709 = vmatpush3.bf16.msra.mxu1 %v764_v18  ;;  %v766_v25 = vld [vmem:[%s1013_s4 + $0x20] sm:$0xff]   ;;  %vm639_vm3 = vmpackc.low %vm63_vm2, %vm63_vm2  ;;  %v769_v28 = vld [vmem:[%s1013_s4 + $0x8] sm:$0xff]  }
  0x27   :  { %677 = vmatpush3.bf16.msra.mxu0 %v752_v6  ;;  %710 = vmatprep.subr.bf16.mxu1 %v879_v0  ;;  %v770_v29 = vld [vmem:[%s1013_s4] sm:$0xff]   ;;  %v771_v40 = vld [vmem:[%s1014_s5 + $0x8] sm:$0xff]   ;;  %v773_v50 = vld [vmem:[#allocation5 + $0x70] ss:$8 sps:$4 sm:$0xff]  }
  0x28   :  { %678 = vmatprep.subr.bf16.mxu0 %v753_v7  ;;  %v362_v30 = vld [vmem:[%s1011_s2] sm:$0xff]  ;;  %v775_v51 = vld [vmem:[#allocation5 + $0x74] ss:$8 sps:$4 sm:$0xff]   ;;  %v779_v58 = vld [vmem:[#allocation5 + $0x50] ss:$8 sps:$4 sm:$0xff]  }
  0x29   :  { %364 = vrot.lane.b32.xlu0 %v362_v30, %s882_s3  ;;  %v620_v32 = vld [vmem:[%s1016_s7] ss:$0 sm:$0xff]  ;;  %v641_v41 = vld [vmem:[%s1016_s7 + $0x1] ss:$0 sm:$0xff]  ;;  %v778_v52 = vld [vmem:[#allocation5 + $0x64] ss:$8 sps:$4 sm:$0xff]  }
  0x2a   :  { %711 = vmatpush3.bf16.msra.mxu1 %v765_v21  ;;  %v772_v49 = vld [vmem:[%s1014_s5] sm:$0xff]   ;;  %v781_v55 = vld [vmem:[#allocation5 + $0x54] ss:$8 sps:$4 sm:$0xff]   ;;  %v785_v62 = vld [vmem:[#allocation5 + $0x30] ss:$8 sps:$4 sm:$0xff]  }
  0x2b   :  { %679 = vmatpush3.bf16.msra.mxu0 %v754_v8  ;;  %712 = vmatprep.subr.bf16.mxu1 %v879_v0  ;;  %v776_v53 = vld [vmem:[#allocation5 + $0x60] ss:$8 sps:$4 sm:$0xff]   ;;  %v784_v59 = vld [vmem:[#allocation5 + $0x44] ss:$8 sps:$4 sm:$0xff]   ;;  %v787_v61 = vld [vmem:[#allocation5 + $0x34] ss:$8 sps:$4 sm:$0xff]  }
  0x2c   :  { %680 = vmatprep.subr.bf16.mxu0 %v755_v9  ;;  %v782_v60 = vld [vmem:[#allocation5 + $0x40] ss:$8 sps:$4 sm:$0xff]   ;;  %v790_v63 = vld [vmem:[#allocation5 + $0x24] ss:$8 sps:$4 sm:$0xff]   ;;  %v793_v1 = vld [vmem:[#allocation5 + $0x14] ss:$8 sps:$4 sm:$0xff]  }
  0x2d   :  { %v791_v2 = vld [vmem:[#allocation5 + $0x10] ss:$8 sps:$4 sm:$0xff]   ;;  %v796_v6 = vld [vmem:[#allocation5 + $0x4] ss:$8 sps:$4 sm:$0xff]   ;;  %v794_v7 = vld [vmem:[#allocation5] ss:$8 sps:$4 sm:$0xff]  }
  0x2e   :  { %713 = vmatpush3.bf16.msra.mxu1 %v766_v25  ;;  %v884_v8 = vmov 0   ;;  %v650_v9 = vld [vmem:[%s1016_s7 + $0x2] ss:$0 sm:$0xff] }
  0x2f   :  { %681 = vmatpush3.bf16.msra.mxu0 %v756_v10  ;;  %714 = vmatprep.subr.bf16.mxu1 %v879_v0 }
  0x30   :  { %682 = vmatprep.subr.bf16.mxu0 %v757_v11 }
  0x32   :  { %715 = vmatpush3.bf16.msra.mxu1 %v767_v26 }
  0x33   :  { %683 = vmatpush3.bf16.msra.mxu0 %v758_v15  ;;  %716 = vmatprep.subr.bf16.mxu1 %v879_v0 }
  0x34   :  { %684 = vmatprep.subr.bf16.mxu0 %v759_v16 }
  0x36   :  { %717 = vmatpush3.bf16.msra.mxu1 %v768_v27 }
  0x37   :  { %685 = vmatpush3.bf16.msra.mxu0 %v760_v19  ;;  %718 = vmatprep.subr.bf16.mxu1 %v879_v0 }
  0x38   :  { %686 = vmatprep.subr.bf16.mxu0 %v761_v20  ;;  %v72_v20 = vld [vmem:[%s1016_s7 + $0x3] sm:$0x3]  ;;  %s885_s7 = smov [#allocation7]  }
  0x39   :  { %s610_s28 = sshll.u32 %s885_s7, 4  ;;  %s611_s28 = int_to_ptr.vmem [resolvable:$true] %s610_s28 }
  0x3a   :  { %719 = vmatpush3.bf16.msra.mxu1 %v769_v28  ;;  %s847_s29 = scalar_lea.vmem %s611_s28, 256  ;;  %p852_p11 = scmp.lt.s32.totalorder %s611_s28, %s611_s28 }
  0x3b   :  { %687 = vmatpush3.bf16.msra.mxu0 %v762_v24  ;;  %720 = vmatprep.subr.bf16.mxu1 %v879_v0  ;;  %p848_p10 = scmp.ne.s32.totalorder %s611_s28, %s847_s29  ;;  %p853_p12 = scmp.lt.s32.totalorder %s847_s29, %s847_s29 }
  0x3c   :  { %726 = vmatprep.subr.bf16.mxu0 %v879_v0 }
  0x3d   :  { %p854_p13 = por %p853_p12, %p852_p11 }
  0x3e   :  { %640 = vmatmul.mubr.msk.bf16.vlgmr.msra.gmra.mxu0 %vm639_vm3, %v880_v17  ;;  %721 = vmatpush3.bf16.msra.mxu1 %v770_v29  ;;  %v459_v17 = vlaneseq }
  0x3f   :  { %730 = vmatprep.mubr.msk.bf16.mxu0 %vm881_vm4, %v879_v0  ;;  %727 = vmatpush3.bf16.msra.mxu0 %v771_v40  ;;  %p855_p0 = pnand %p854_p13, %p848_p10 }
  0x40   :  { %728 = vmatprep.subr.bf16.mxu0 %v879_v0  ;;  %549 = vmatprep.subr.bf16.mxu1 %v775_v51  ;;  %v788_v0 = vld [vmem:[#allocation5 + $0x20] ss:$8 sps:$4 sm:$0xff]   ;;  %v460_v18 = vshrl.u32 %v459_v17, 7 }
  0x42   :  { %v461_v19 = vsub.s32 0, %v460_v18  ;;  %v465_v21 = vsub.s32 1, %v460_v18 }
  0x43   :  { %729 = vmatpush3.bf16.msra.mxu0 %v772_v49 }
  0x44   :  { %v462_v22 = vrot.slane %v72_v20, %v461_v19  ;;  %v466_v23 = vrot.slane %v72_v20, %v465_v21 }
  0x9b   :  { %v365_v54 = vpop.permute.xlu0 %364 }
  0xfe   :  { %v688_v31 = vpop.f32.mrf.mxu0 }
 0x100   :  { %v689_v33 = vpop.f32.mrf.mxu0 }
 0x101   :  { %v690_v34 = vadd.f32 %v689_v33, %v688_v31 }
 0x102   :  { %v691_v35 = vpop.f32.mrf.mxu0 }
 0x103   :  { %v242_v36 = vadd.f32 %v690_v34, %v620_v32 }
 0x104   :  { %v692_v37 = vpop.f32.mrf.mxu0 }
 0x105   :  { %v247_v38 = vmax.f32 %v242_v36, 0.0 }
 0x107   :  { %v248_v39 = vpack.c.bf16 %v247_v38, %v247_v38 }
 0x109   :  { %723 = vmatmul.mubr.bf16.vlgmr.msra.gmra.mxu1 %v248_v39 }
 0x10a   :  { %550 = vmatpush1.bf16.msra.mxu1 %v773_v50  ;;  %581 = vmatprep.mubr.bf16.mxu1 %v884_v8 }
 0x10b   :  { %551 = vmatprep.subr.bf16.mxu1 %v778_v52 }
 0x10e   :  { %552 = vmatpush1.bf16.msra.mxu1 %v776_v53 }
 0x10f   :  { %553 = vmatprep.subr.bf16.mxu1 %v781_v55 }
 0x112   :  { %554 = vmatpush1.bf16.msra.mxu1 %v779_v58 }
 0x113   :  { %555 = vmatprep.subr.bf16.mxu1 %v784_v59 }
 0x116   :  { %556 = vmatpush1.bf16.msra.mxu1 %v782_v60 }
 0x117   :  { %557 = vmatprep.subr.bf16.mxu1 %v787_v61 }
 0x11a   :  { %558 = vmatpush1.bf16.msra.mxu1 %v785_v62 }
 0x11b   :  { %559 = vmatprep.subr.bf16.mxu1 %v790_v63 }
 0x11e   :  { %560 = vmatpush1.bf16.msra.mxu1 %v788_v0 }
 0x11f   :  { %561 = vmatprep.subr.bf16.mxu1 %v793_v1 }
 0x122   :  { %562 = vmatpush1.bf16.msra.mxu1 %v791_v2 }
 0x123   :  { %563 = vmatprep.subr.bf16.mxu1 %v796_v6 }
 0x126   :  { %564 = vmatpush1.bf16.msra.mxu1 %v794_v7 }
 0x1c9   :  { %v353_v42 = vpop.f32.mrf.mxu1 }
 0x1ca   :  { %v354_v43 = vadd.f32 %v641_v41, %v353_v42 }
 0x1cb   :  { %v724_v44 = vpop.f32.mrf.mxu1 }
 0x1cc   :  { %v359_v45 = vmul.f32 0.5, %v354_v43 }
 0x1cd   :  { %v356_v46 = vpop.f32.mrf.mxu1 }
 0x1ce   :  { %v360_v47 = vmul.f32 1.442695, %v359_v45 }
 0x1cf   :  { %v725_v48 = vpop.f32.mrf.mxu1 }
 0x1d0   :  { %797 = vpow2.f32 %v360_v47 }
 0x1dd   :  { %v798_v56 = vpop.eup %797 }
 0x1de   :  { %v367_v57 = vmul.f32 %v798_v56, %v365_v54 }
 0x1e0   :  { %369 = vrot.lane.b32.xlu0 %v367_v57, %s883_s24 }
 0x252   :  { %v370_v3 = vpop.permute.xlu0 %369 }
 0x253   :  { %v372_v4 = vadd.f32 %v370_v3, %v354_v43 }
 0x255   :  { %v373_v5 = vpack.c.bf16 %v372_v4, %v372_v4 }
 0x257   :  { %731 = vmatmul.mubr.msk.bf16.vlgmr.msra.gmra.mxu0 %vm396_vm5, %v373_v5 }
 0x317   :  { %v434_v10 = vpop.f32.mrf.mxu0 }
 0x318   :  { %v435_v11 = vadd.f32 %v650_v9, %v434_v10 }
 0x319   :  { %v732_v12 = vpop.f32.mrf.mxu0 }
 0x31a   :  { %v440_v13 = vmax.f32 %v435_v11, 0.0 }
 0x31b   :  { %v437_v14 = vpop.f32.mrf.mxu0 }
 0x31c   :  { %v441_v15 = vpack.c.bf16 %v440_v13, %v440_v13 }
 0x31d   :  { %v733_v16 = vpop.f32.mrf.mxu0 }
 0x31e   :  { %582 = vmatmul.mubr.bf16.vlgmr.msra.gmra.mxu1 %v441_v15 }
 0x3de   :  { %v583_v24 = vpop.f32.mrf.mxu1 }
 0x3df   :  { %v584_v25 = vadd.f32 %v583_v24, %v462_v22 }
 0x3e0   :  { %v585_v26 = vpop.f32.mrf.mxu1 }
 0x3e1   :  { %v670_v27 = vmul.f32 -1.442695, %v584_v25  ;;  %v586_v28 = vadd.f32 %v585_v26, %v466_v23 }
 0x3e2   :  { %v587_v29 = vpop.f32.mrf.mxu1 }
 0x3e3   :  { %799 = vpow2.f32 %v670_v27  ;;  %v671_v30 = vmul.f32 -1.442695, %v586_v28 }
 0x3e4   :  { %v588_v31 = vpop.f32.mrf.mxu1 }
 0x3e5   :  { %801 = vpow2.f32 %v671_v30 }
 0x3f0   :  { %v800_v32 = vpop.eup %799 }
 0x3f1   :  { %v596_v33 = vadd.f32 1.0, %v800_v32 }
 0x3f2   :  { %v802_v34 = vpop.eup %801 }
 0x3f3   :  { %803 = vrcp.f32 %v596_v33  ;;  %v597_v35 = vadd.f32 1.0, %v802_v34 }
 0x3f5   :  { %805 = vrcp.f32 %v597_v35 }
 0x400   :  { %v804_v36 = vpop.eup %803 }
 0x401   :  { %602 = vst [vmem:[#allocation7] sm:$0xff] %v804_v36 }
 0x402   :  { %v806_v37 = vpop.eup %805 }
 0x403   :  { %603 = vst [vmem:[#allocation7 + $0x8] sm:$0xff] %v806_v37 }
 0x404   :  { %858 = shalt.err (!%p855_p0)
}
 0x405   :  { %613 = dma.vmem_to_hbm [thread:$0]  %s611_s28, 256, %s1017_s8, [#allocation4]  }
 0x406   :  { %871 = dma.done.wait [#allocation4], 256  }
 0x407   :  { %872 = vsyncadd [#allocation4], 4294967040 }
 0x408   :  { %617 = vsyncpa [#allocation3], 1 }
 0x409   :  { %618 = vsyncpa [#allocation6], 1 }
 0x40a   :  { %619 = vsyncpa [#allocation4], 1 }

</bundles_post_ra>
